<compile_context>
chip_gen: v7x
topology: tpu7x:2x2x1
jax: 0.10.0
libtpu: 0.0.40
codegen_flags: <defaults>
</compile_context>

<pallas_src>
import jax
import jax.numpy as jnp
from jax.experimental import pallas as pl
from jax.experimental.pallas import tpu as pltpu


def _copy_kernel(x_ref, o_ref):
    # Straight block copy; the channel shuffle lives entirely in the
    # BlockSpec index maps / wrapper views.
    o_ref[...] = x_ref[...]


def _sublane_quantum(itemsize):
    # Sub-32-bit dtypes pack 2x/4x rows per sublane group.
    return {4: 8, 2: 16, 1: 32}.get(itemsize, 8)


def _budgets():
    """(per-block byte budget, base scoped-VMEM request) per TPU generation."""
    kind = ""
    try:
        kind = jax.devices()[0].device_kind.lower()
    except Exception:
        pass
    if "v5 lite" in kind or "v5e" in kind or "v5lite" in kind:
        # v5e (~820 GB/s HBM): 1-2 MiB blocks already amortize the ~0.35 us
        # per-step overhead; keep the explicit scoped-VMEM request modest.
        return (2 << 20), (24 << 20)
    # v6e (~1.4 TB/s) / v7x (~3.2 TB/s): ~4 MiB blocks keep this HBM-bound
    # copy >90% of roofline.  48 MiB scoped request stays under v7x's 64 MiB
    # physical VMEM per TensorCore (and far under v5e/v6e's 128 MiB).
    return (4 << 20), (48 << 20)


def _row_tile(nrows, cpg, itemsize, budget_bytes):
    """Largest sublane-aligned spatial-row tile fitting the byte budget."""
    q = _sublane_quantum(itemsize)
    rows_fit = budget_bytes // max(1, cpg * 128 * itemsize)
    if rows_fit >= nrows:
        return nrows                        # whole plane; full-dim exemption
    rt = max(q, (rows_fit // q) * q)        # sublane-aligned, >= one quantum
    return min(rt, nrows)


def channel_shuffle(x, g):
    B, C, H, W = x.shape
    assert C % g == 0, "num_channels must be divisible by g"
    cpg = C // g
    HW = H * W
    itemsize = x.dtype.itemsize

    if g == 1 or cpg == 1:
        # Shuffle degenerates to the identity permutation.
        return x

    block_budget, vmem_base = _budgets()
    cost = pl.CostEstimate(flops=0, transcendentals=0,
                           bytes_accessed=2 * B * C * HW * itemsize)

    if HW % 128 == 0:
        nrows = HW // 128
        row_tile = _row_tile(nrows, cpg, itemsize, block_budget)
        num_t = pl.cdiv(nrows, row_tile)
        block_bytes = cpg * row_tile * 128 * itemsize
        # 2 arrays x 2 pipeline buffers x block + headroom, capped below v7x
        # physical VMEM per TensorCore.
        vmem_limit = min(56 << 20, max(vmem_base, 4 * block_bytes + (8 << 20)))

        # x5[b, i, j, r, l] = x[b, i*cpg + j, spatial r*128 + l]  (free view)
        x5 = x.reshape(B, g, cpg, nrows, 128)

        # out5[b, j, i, r, l] = x5[b, i, j, r, l]; reshaping out5 back to
        # (B, C, H, W) puts element (b, j, i, .) at channel j*g + i, i.e. the
        # exact CS permutation.
        out5 = pl.pallas_call(
            _copy_kernel,
            out_shape=jax.ShapeDtypeStruct((B, cpg, g, nrows, 128), x.dtype),
            # Grid always has >= B*g >= 2 parallel steps -> both v7x TCs busy.
            grid=(B, g, num_t),
            in_specs=[pl.BlockSpec((None, None, cpg, row_tile, 128),
                                   lambda b, i, t: (b, i, 0, t, 0))],
            out_specs=pl.BlockSpec((None, cpg, None, row_tile, 128),
                                   lambda b, i, t: (b, 0, i, t, 0)),
            compiler_params=pltpu.CompilerParams(
                dimension_semantics=("parallel", "parallel", "parallel"),
                vmem_limit_bytes=vmem_limit),
            cost_estimate=cost,
        )(x5)
        return out5.reshape(B, C, H, W)

    # Fallback for spatial sizes where H*W is not a multiple of 128: copy one
    # whole (cpg_tile, H*W) group slab per grid step.  H*W is the full last
    # dim of both views (full-dim exemption), so no 16-lane masked per-plane
    # copies and cpg x fewer grid steps than the old per-channel fallback.
    q = _sublane_quantum(itemsize)
    fit = max(1, block_budget // max(1, HW * itemsize))
    cpg_tile = cpg if fit >= cpg else min(cpg, max(q, (fit // q) * q))
    num_c = pl.cdiv(cpg, cpg_tile)
    block_bytes = cpg_tile * HW * itemsize
    vmem_limit = min(56 << 20, max(vmem_base, 4 * block_bytes + (8 << 20)))

    x4 = x.reshape(B, g, cpg, HW)
    out4 = pl.pallas_call(
        _copy_kernel,
        out_shape=jax.ShapeDtypeStruct((B, cpg, g, HW), x.dtype),
        grid=(B, g, num_c),
        in_specs=[pl.BlockSpec((None, None, cpg_tile, HW),
                               lambda b, i, c: (b, i, c, 0))],
        out_specs=pl.BlockSpec((None, cpg_tile, None, HW),
                               lambda b, i, c: (b, c, i, 0)),
        compiler_params=pltpu.CompilerParams(
            dimension_semantics=("parallel", "parallel", "parallel"),
            vmem_limit_bytes=vmem_limit),
        cost_estimate=cost,
    )(x4)
    return out4.reshape(B, C, H, W)


class CS:
    """Pallas equivalent of the PyTorch CS module (forward only)."""

    def __init__(self, g):
        self.g = g

    def __call__(self, x):
        return channel_shuffle(x, self.g)


def _reference(x, g):
    # Pure-JAX reference mirroring the PyTorch view/transpose/view.
    B, C, H, W = x.shape
    cpg = C // g
    return (x.reshape(B, g, cpg, H, W)
             .transpose(0, 2, 1, 3, 4)
             .reshape(B, C, H, W))


if __name__ == "__main__":
    key = jax.random.PRNGKey(0)

    # Primary check: module-sized example (main path, f32).
    B, C, H, W = 2, 8, 16, 16
    g = 4  # number of channel groups
    x = jax.random.normal(key, (B, C, H, W), dtype=jnp.float32)
    out = CS(g)(x)
    jax.block_until_ready(out)
    assert out.shape == (B, C, H, W)
    assert jnp.array_equal(out, _reference(x, g)), "channel shuffle mismatch"

    # Secondary check: small-cpg bf16 case (exercises sublane-packed tiling).
    x2 = jax.random.normal(jax.random.PRNGKey(0), (1, 12, 8, 16),
                           dtype=jnp.bfloat16)
    out2 = CS(6)(x2)
    jax.block_until_ready(out2)
    assert jnp.array_equal(out2, _reference(x2, 6)), "bf16 shuffle mismatch"

    print("KERNEL_OK")
</pallas_src>

<mosaic_0001>
module attributes {stable_mosaic.version = 11 : i64} {
  func.func @_copy_kernel(%arg0: i32, %arg1: i32, %arg2: i32, %arg3: memref<1x1x2x2x128xf32, #tpu.memory_space<vmem>>, %arg4: memref<1x2x1x2x128xf32, #tpu.memory_space<vmem>>) attributes {dimension_semantics = [#tpu.dimension_semantics<parallel>, #tpu.dimension_semantics<parallel>, #tpu.dimension_semantics<parallel>], iteration_bounds = array<i64: 2, 4, 1>, scalar_prefetch = 0 : i64, scratch_operands = 0 : i64, tpu.core_type = #tpu.core_type<tc>, window_params = [{transform_indices = @transform_0, window_bounds = array<i64: 1, 1, 2, 2, 128>}, {transform_indices = @transform_1, window_bounds = array<i64: 1, 2, 1, 2, 128>}]} {
    %c0 = arith.constant 0 : index
    %c0_0 = arith.constant 0 : index
    %c0_1 = arith.constant 0 : index
    %c0_2 = arith.constant 0 : index
    %c0_3 = arith.constant 0 : index
    %0 = vector.load %arg3[%c0, %c0_0, %c0_1, %c0_2, %c0_3] : memref<1x1x2x2x128xf32, #tpu.memory_space<vmem>>, vector<1x1x2x2x128xf32>
    %1 = vector.shape_cast %0 : vector<1x1x2x2x128xf32> to vector<2x2x128xf32>
    %c0_4 = arith.constant 0 : index
    %c0_5 = arith.constant 0 : index
    %c0_6 = arith.constant 0 : index
    %c0_7 = arith.constant 0 : index
    %c0_8 = arith.constant 0 : index
    %2 = vector.load %arg4[%c0_4, %c0_5, %c0_6, %c0_7, %c0_8] : memref<1x2x1x2x128xf32, #tpu.memory_space<vmem>>, vector<1x2x1x2x128xf32>
    %3 = vector.shape_cast %2 : vector<1x2x1x2x128xf32> to vector<2x2x128xf32>
    %4 = vector.shape_cast %1 : vector<2x2x128xf32> to vector<1x2x1x2x128xf32>
    tpu.vector_store %arg4[%c0_4, %c0_5, %c0_6, %c0_7, %c0_8], %4 {strides = array<i32>} : memref<1x2x1x2x128xf32, #tpu.memory_space<vmem>>, vector<1x2x1x2x128xf32>,
    return
  }
  func.func @transform_0(%arg0: i32, %arg1: i32, %arg2: i32) -> (i32, i32, i32, i32, i32) {
    %c0_i32 = arith.constant 0 : i32
    %c0_i32_0 = arith.constant 0 : i32
    %c0_i32_1 = arith.constant 0 : i32
    return %arg0, %arg1, %c0_i32, %arg2, %c0_i32_0 : i32, i32, i32, i32, i32
  }
  func.func @transform_1(%arg0: i32, %arg1: i32, %arg2: i32) -> (i32, i32, i32, i32, i32) {
    %c0_i32 = arith.constant 0 : i32
    %c0_i32_0 = arith.constant 0 : i32
    %c0_i32_1 = arith.constant 0 : i32
    return %arg0, %c0_i32, %arg1, %arg2, %c0_i32_0 : i32, i32, i32, i32, i32
  }
}

</mosaic_0001>

<bundles_post_ra>
// kernel: tpu_custom_call.1
= control target key start
LH: loop header
LB: loop body
LE: loop exit
PB: predicated region body
PF: predicated region fallthrough
CT: control target
= control target key end

     0   :  { %6 = vsyncpa [#allocation3], 0  ;;  %s720_s0 = inlined_call_operand.hbm [shape: f32[2,4,2,2,128], index: 0, kind: input, shape index: {}]   ;;  %s721_s1 = inlined_call_operand.hbm [shape: f32[2,2,4,2,128], index: 1, kind: output, shape index: {}]  }
   0x1   :  { %8 = vsyncpa [#allocation3 + $0x1], 0 }
   0x2   :  { %9 = vsyncpa [#allocation4], 0 }
   0x3   :  { %11 = vsyncpa [#allocation4 + $0x1], 0  ;;  %s525_s6 = smov 0   ;;  %s527_s7 = smov 0  }
   0x4   :  { %s529_s8 = smov 0   ;;  %s531_s9 = smov 0  }
   0x5   :  { %s533_s10 = smov 0   ;;  %s535_s11 = smov 0  }
   0x6   :  { %s537_s12 = smov 0   ;;  %s539_s13 = smov 0  }
   0x7 LB: > { %s279_s14 = sadd.s32 4294967295, %s506_s13   ;;  %s280_s15 = sadd.s32 4294967294, %s506_s13   ;;  %s506_s13 = sphi %s539_s13, %s17_s13   ;;  %s502_s12 = sphi %s537_s12, %s736_s12   ;;  %s498_s11 = sphi %s535_s11, %s735_s11   ;;  %s494_s10 = sphi %s533_s10, %s734_s10   ;;  %s490_s9 = sphi %s531_s9, %s733_s9   ;;  %s486_s8 = sphi %s529_s8, %s732_s8   ;;  %s482_s7 = sphi %s527_s7, %s731_s7   ;;  %s478_s6 = sphi %s525_s6, %s730_s6  }
   0x8   : > { %s32_s16 = sadd.s32 1, %s498_s11  ;;  %s36_s17 = sadd.s32 1, %s502_s12 }
   0x9   : > { %p34_p0 = scmp.ge.s32.totalorder %s32_s16, 4  ;;  %s47_s18 = sadd.s32 1, %s486_s8 }
   0xa   : > { %p54_p1 = scmp.ne.s32.totalorder %s486_s8, %s482_s7  ;;  %p55_p2 = scmp.eq.s32.totalorder %s506_s13, 0 }
   0xb   : > { %s738_s16 = smov (%p34_p0, %s32_s16), 0  ;;  %s740_s17 = smov (!%p34_p0, %s36_s17), %s502_s12 }
   0xc   : > { %s41_s19 = ssub.s32 %s498_s11, %s738_s16  ;;  %p578_p3 = por %p55_p2, %p54_p1 }
   0xd   : > { %p38_p4 = scmp.ge.s32.totalorder %s740_s17, 2  ;;  %p60_p5 = scmp.ne.s32.totalorder %s482_s7, %s478_s6 }
   0xe   : > { %p61_p6 = scmp.eq.s32.totalorder %s279_s14, 0  ;;  %p88_p7 = scmp.eq.s32.totalorder %s279_s14, 7 }
   0xf   : > { %s742_s17 = smov (%p38_p4, %s740_s17), 0  ;;  %p94_p10 = scmp.eq.s32.totalorder %s280_s15, 7 }
  0x10   : > { %p586_p8 = por %p61_p6, %p60_p5  ;;  %p590_p9 = por %p88_p7, %p54_p1 }
  0x11   : > { %s40_s23 = ssub.s32 %s502_s12, %s742_s17  ;;  %p596_p12 = por %p94_p10, %p60_p5 }
  0x12   : > { %s725_s22 = scalar_select %p590_p9, 1, 0 }
  0x13   : > { %s42_s24 = sor.u32 %s41_s19, %s40_s23  ;;  %p307_p13 = scmp.lt.s32.totalorder %s506_s13, 8 }
  0x14   : > { %p45_p11 = scmp.eq.s32.totalorder %s42_s24, 0  ;;  %s114_s26 = sand.u32 1, %s486_s8  }
  0x15   : > { %s726_s25 = scalar_select %p596_p12, 1, 0 }
  0x16   : > { %s603_s27 = scalar_select %p45_p11, %s486_s8, %s47_s18  }
  0x17   : > { %s283_s28 = sshll.u32 %s114_s26, 2  ;;  %s284_s29 = sshll.u32 %s498_s11, 1 }
  0x18   : > { %s285_s30 = sshll.u32 %s502_s12, 3  ;;  %s118_s2 = scalar_lea.vmem [#allocation2], %s283_s28 }
  0x19   : > { %s128_s3 = sshll.u32 %s118_s2, 4  ;;  %s125_s4 = sadd.s32 %s285_s30, %s284_s29  ;;  %s607_s3 = int_to_ptr.vmem [resolvable:$true] %s128_s3 }
  0x1a   : > { %s286_s5 = sshll.u32 %s125_s4, 5  ;;  %p611_p0 = pnand %p307_p13, %p578_p3 }
  0x1b   : > { %s618_s18 = scalar_lea.hbm %s720_s0, %s286_s5  ;;  %s620_s23 = scalar_lea.sflag [#allocation3], %s114_s26 }
  0x1c   : > { %s378_s24 = scalar_lea.hbm %s618_s18, 64  ;;  %p380_p2 = pneg %p611_p0 }
  0x1d   : > { %p379_p1 = scmp.ne.s32.totalorder %s618_s18, %s378_s24  ;;  %s383_s29 = scalar_lea.hbm %s720_s0, 512 }
  0x1e   : > { %p384_p5 = scmp.lt.u32.totalorder %s618_s18, %s720_s0  ;;  %p385_p6 = scmp.lt.u32.totalorder %s383_s29, %s378_s24 }
  0x1f   : > { %p381_p3 = pnand %p380_p2, %p379_p1  ;;  %p387_p10 = scmp.lt.u32.totalorder %s378_s24, %s618_s18 }
  0x20   : > { %p386_p7 = por %p385_p6, %p384_p5 }
  0x21   : > { %p382_p4 = pneg %p381_p3 }
  0x22   : > { %p388_p11 = por %p387_p10, %p386_p7 }
  0x24   : > { %p389_p13 = pnand %p388_p11, %p382_p4 }
  0x26   : > { %392 = shalt.err (!%p389_p13)
}
  0x27   : > { %s393_s26 = scalar_lea.vmem %s607_s3, 64  ;;  %s508_s4 = smov [#allocation2]  }
  0x28   : > { %p394_p1 = scmp.ne.s32.totalorder %s607_s3, %s393_s26  ;;  %s398_s5 = sshll.u32 %s508_s4, 4  ;;  %s399_s5 = int_to_ptr.vmem [resolvable:$false] %s398_s5 }
  0x29   : > { %s400_s15 = scalar_lea.vmem %s399_s5, 128  ;;  %p401_p9 = scmp.lt.s32.totalorder %s607_s3, %s399_s5 }
  0x2a   : > { %p396_p3 = pnand %p394_p1, %p380_p2  ;;  %p402_p5 = scmp.lt.s32.totalorder %s400_s15, %s393_s26 }
  0x2c   : > { %p397_p12 = pneg %p396_p3  ;;  %p403_p6 = por %p402_p5, %p401_p9 }
  0x2e   : > { %p404_p7 = pnand %p403_p6, %p397_p12 }
  0x30   : > { %407 = shalt.err (!%p404_p7)
}
  0x31   : > { %s509_s19 = smov 32   ;;  %s510_s24 = smov 2  }
  0x32   : > { %302 = dma.hbm_to_vmem [thread:$0]  (!%p611_p0), %s618_s18, 64, %s607_s3, %s620_s23, %s509_s19, %s509_s19, %s510_s24  }
  0x33   : > { %p287_p2 = scmp.ge.s32.totalorder %s506_s13, 1  ;;  %p136_p4 = scmp.lt.s32.totalorder %s506_s13, 9 }
  0x35   : > { %p137_p10 = pnand %p287_p2, %p136_p4 }
  0x36   : > { %s651_s20 = sand.u32 (!%p137_p10), 1, %s482_s7  }
  0x37   : > { %140 = sbr.rel (%p137_p10) target bundleno = 92 (0x5c), region = 24  ;;  %s288_s28 = sshll.u32 (!%p137_p10), %s651_s20, 2 }
  0x38   : > { %s143_s29 = scalar_lea.sflag (!%p137_p10), [#allocation3], %s651_s20  ;;  %s146_s30 = scalar_lea.vmem (!%p137_p10), [#allocation2], %s288_s28 }
  0x3e   : > { %469 = dma.done.wait (%p586_p8), %s143_s29, 64  }
  0x3f   : > { %471 = vsyncadd (%p586_p8), %s143_s29, 4294967232  ;;  %s164_s3 = scalar_lea.vmem [#allocation5], %s288_s28  ;;  %s291_s18 = sshll.u32 %s494_s10, 3  ;;  %v165_v0 = vld [vmem:[%s146_s30] sm:$0xf]  }
  0x40   : > { %s185_s14 = sshll.u32 %s164_s3, 4  ;;  %s182_s23 = sadd.s32 %s490_s9, %s291_s18  ;;  %167 = vst [vmem:[%s164_s3] sm:$0xf] %v165_v0   ;;  %s661_s14 = int_to_ptr.vmem [resolvable:$true] %s185_s14 }
  0x41   : > { %s292_s2 = sshll.u32 %s182_s23, 5  ;;  %s170_s21 = scalar_lea.sflag [#allocation4], %s651_s20 }
  0x42   : > { %s666_s5 = scalar_lea.hbm %s721_s1, %s292_s2  ;;  %s408_s15 = scalar_lea.vmem %s661_s14, 64 }
  0x43   : > { %p409_p8 = scmp.ne.s32.totalorder %s661_s14, %s408_s15  ;;  %p728_p9 = scmp.ne.s32.totalorder %s725_s22, 0 }
  0x44   : > { %s511_s9 = smov [#allocation5]  }
  0x45   : > { %p410_p12 = pnand %p409_p8, %p728_p9  ;;  %s412_s10 = sshll.u32 %s511_s9, 4  ;;  %s413_s10 = int_to_ptr.vmem [resolvable:$false] %s412_s10 }
  0x46   : > { %s414_s19 = scalar_lea.vmem %s413_s10, 128  ;;  %p415_p11 = scmp.lt.s32.totalorder %s661_s14, %s413_s10 }
  0x47   : > { %p411_p0 = pneg %p410_p12  ;;  %p416_p13 = scmp.lt.s32.totalorder %s414_s19, %s408_s15 }
  0x49   : > { %p417_p1 = por %p416_p13, %p415_p11 }
  0x4b   : > { %p418_p3 = pnand %p417_p1, %p411_p0 }
  0x4d   : > { %421 = shalt.err (!%p418_p3)
}
  0x4e   : > { %s422_s24 = scalar_lea.hbm %s666_s5, 64  ;;  %s426_s30 = scalar_lea.hbm %s721_s1, 512 }
  0x4f   : > { %p423_p5 = scmp.ne.s32.totalorder %s666_s5, %s422_s24  ;;  %p427_p2 = scmp.lt.u32.totalorder %s666_s5, %s721_s1 }
  0x50   : > { %p428_p4 = scmp.lt.u32.totalorder %s426_s30, %s422_s24  ;;  %p430_p8 = scmp.lt.u32.totalorder %s422_s24, %s666_s5 }
  0x51   : > { %p424_p6 = pnand %p423_p5, %p728_p9 }
  0x52   : > { %p429_p10 = por %p428_p4, %p427_p2 }
  0x53   : > { %p425_p7 = pneg %p424_p6 }
  0x54   : > { %p431_p12 = por %p430_p8, %p429_p10 }
  0x56   : > { %p432_p0 = pnand %p431_p12, %p425_p7 }
  0x58   : > { %435 = shalt.err (!%p432_p0)
}
  0x59   : > { %s512_s23 = smov 32   ;;  %s513_s2 = smov 128  }
  0x5a   : > { %s514_s26 = smov 2  }
  0x5b   : > { %297 = dma.vmem_to_hbm [thread:$0]  (%p728_p9), %s661_s14, 64, %s666_s5, %s170_s21, %s512_s23, %s513_s2, %s514_s26  }
  0x5c PF: > { %p308_p11 = scmp.ge.s32.totalorder %s506_s13, 2  ;;  %s200_s4 = sand.u32 1, %s478_s6  }
  0x5d   : > { %p729_p13 = scmp.ne.s32.totalorder %s726_s25, 0  ;;  %s201_s15 = scalar_lea.sflag [#allocation4], %s200_s4 }
  0x5f   : > { %p304_p1 = pnand %p308_p11, %p729_p13 }
  0x61   : > { %473 = dma.done.wait (!%p304_p1), %s201_s15, 64  }
  0x62   : > { %475 = vsyncadd (!%p304_p1), %s201_s15, 4294967232  ;;  %s17_s13 = sadd.s32 1, %s506_s13   ;;  %s730_s6 = smov %s482_s7 }
  0x63   : > { %p14_p3 = scmp.ge.s32.totalorder %s17_s13, 10   ;;  %s731_s7 = smov %s486_s8 }
  0x64   : > { %s732_s8 = smov %s603_s27  ;;  %s733_s9 = smov %s498_s11 }
  0x65   : > { %s734_s10 = smov %s502_s12  ;;  %s735_s11 = smov %s738_s16 }
  0x66   : > { %s736_s12 = smov %s742_s17  ;;  %16 = sbr.rel (!%p14_p3) target bundleno = 7 (0x7), region = 69 }
  0x6d   :  { %206 = vsyncpa [#allocation3], 1 }
  0x6e   :  { %208 = vsyncpa [#allocation3 + $0x1], 1 }
  0x6f   :  { %209 = vsyncpa [#allocation4], 1 }
  0x70   :  { %211 = vsyncpa [#allocation4 + $0x1], 1 }

</bundles_post_ra>
